<compile_context>
chip_gen: v7x
topology: tpu7x:2x2x1
jax: 0.10.0
libtpu: 0.0.40
codegen_flags: <defaults>
</compile_context>

<pallas_src>
import functools
import math

import jax
import jax.numpy as jnp
from jax.experimental import pallas as pl
from jax.experimental.pallas import tpu as pltpu

_HIGH = jax.lax.Precision.HIGHEST
_ROW_TILE_TARGET = 512          # rows per grid step (multiple of 8)
_N_TILE_TARGET = 512            # output-lane tile (multiple of 128 when tiled)
_VMEM_LIMIT = 64 * 1024 * 1024  # raise scoped VMEM so large tiles compile (v5e default is 16 MiB)

ACT2FN = {"gelu": jax.nn.gelu, "relu": jax.nn.relu, "tanh": jnp.tanh, "silu": jax.nn.silu}


# ---------------------------------------------------------------------------
# tiling helpers
# ---------------------------------------------------------------------------
def _round_up(a, b):
    return (a + b - 1) // b * b


def _pick_row_tile(rows, target=_ROW_TILE_TARGET):
    if rows <= target:
        return _round_up(rows, 8)   # one (padded) block; never bigger than needed
    return target


def _pick_n_tile(n, target=_N_TILE_TARGET):
    if n <= target:
        return n                    # full-N block (full-dim blocks are always legal)
    for t in (target, 384, 256, 128):
        if n % t == 0:
            return t
    return n


def _pad_rows(x, padded_rows):
    rows = x.shape[0]
    if padded_rows == rows:
        return x
    return jnp.pad(x, ((0, padded_rows - rows), (0, 0)))


def _compiler_params(n_axes):
    return pltpu.CompilerParams(
        dimension_semantics=("parallel",) * n_axes,
        vmem_limit_bytes=_VMEM_LIMIT,
    )


# ---------------------------------------------------------------------------
# kernels
# ---------------------------------------------------------------------------
def _rmsnorm_matmul_kernel(x_ref, g_ref, wt_ref, o_ref, *, eps):
    # y = (rmsnorm(x) * g) @ Wt
    x = x_ref[...].astype(jnp.float32)                       # (tm, K)
    mean_square = jnp.mean(x * x, axis=-1, keepdims=True)    # (tm, 1)
    inv = jax.lax.rsqrt(mean_square + eps)                   # EUP rsqrt
    scale = inv * g_ref[...].astype(jnp.float32)             # fuse norm weight into rsqrt factor
    xn = x * scale                                           # single full-tile multiply
    o_ref[...] = jnp.dot(
        xn, wt_ref[...].astype(jnp.float32),
        preferred_element_type=jnp.float32,
    ).astype(o_ref.dtype)


def _matmul_residual_kernel(x_ref, wt_ref, res_ref, o_ref):
    # y = res + x @ Wt
    acc = jnp.dot(
        x_ref[...].astype(jnp.float32), wt_ref[...].astype(jnp.float32),
        preferred_element_type=jnp.float32,
    )
    o_ref[...] = (acc + res_ref[...].astype(jnp.float32)).astype(o_ref.dtype)


def _swiglu_matmul_residual_kernel(gu_ref, wt_ref, res_ref, o_ref, *, inter, act):
    # y = res + (act(gate) * up) @ Wdown_t, with gu = concat([gate, up], -1)
    gu = gu_ref[...].astype(jnp.float32)                     # (tm, 2*inter)
    gate = gu[:, :inter]
    up = gu[:, inter:]
    h = act(gate) * up
    acc = jnp.dot(h, wt_ref[...].astype(jnp.float32), preferred_element_type=jnp.float32)
    o_ref[...] = (acc + res_ref[...].astype(jnp.float32)).astype(o_ref.dtype)


def _causal_attention_kernel(q_ref, k_ref, v_ref, o_ref, *, scale):
    # per-(batch*head) block: softmax((q @ k^T) * scale + causal_mask) @ v
    q = q_ref[...].astype(jnp.float32)                       # (hb, T, hd)
    k = k_ref[...].astype(jnp.float32)
    v = v_ref[...].astype(jnp.float32)
    s = jnp.einsum("bqd,bkd->bqk", q, k, preferred_element_type=jnp.float32) * scale
    t = s.shape[-1]
    row = jax.lax.broadcasted_iota(jnp.int32, (1, t, t), 1)
    col = jax.lax.broadcasted_iota(jnp.int32, (1, t, t), 2)
    s = jnp.where(col <= row, s, -jnp.inf)                   # causal mask
    m = jnp.max(s, axis=-1, keepdims=True)
    p = jnp.exp(s - m)
    denom = jnp.sum(p, axis=-1, keepdims=True)
    out = jnp.einsum("bqk,bkd->bqd", p, v, preferred_element_type=jnp.float32)
    o_ref[...] = (out / denom).astype(o_ref.dtype)


# ---------------------------------------------------------------------------
# pallas_call wrappers
# ---------------------------------------------------------------------------
def rmsnorm_matmul(x2d, g, wt, eps):
    rows, k = x2d.shape
    kw, n = wt.shape
    assert k == kw
    tm = _pick_row_tile(rows)
    padded_rows = _round_up(rows, tm)
    tn = _pick_n_tile(n)
    xp = _pad_rows(x2d, padded_rows)
    out = pl.pallas_call(
        functools.partial(_rmsnorm_matmul_kernel, eps=eps),
        out_shape=jax.ShapeDtypeStruct((padded_rows, n), x2d.dtype),
        grid_spec=pltpu.PrefetchScalarGridSpec(
            num_scalar_prefetch=0,
            grid=(padded_rows // tm, n // tn),
            in_specs=[
                pl.BlockSpec((tm, k), lambda i, j: (i, 0)),
                pl.BlockSpec((1, k), lambda i, j: (0, 0)),     # invariant norm weight
                pl.BlockSpec((k, tn), lambda i, j: (0, j)),
            ],
            out_specs=pl.BlockSpec((tm, tn), lambda i, j: (i, j)),
        ),
        compiler_params=_compiler_params(2),
    )(xp, g.reshape(1, k), wt)
    return out[:rows]


def matmul_residual(x2d, wt, res2d):
    rows, k = x2d.shape
    kw, n = wt.shape
    assert k == kw and res2d.shape == (rows, n)
    tm = _pick_row_tile(rows)
    padded_rows = _round_up(rows, tm)
    tn = _pick_n_tile(n)
    xp = _pad_rows(x2d, padded_rows)
    rp = _pad_rows(res2d, padded_rows)
    out = pl.pallas_call(
        _matmul_residual_kernel,
        out_shape=jax.ShapeDtypeStruct((padded_rows, n), res2d.dtype),
        grid_spec=pltpu.PrefetchScalarGridSpec(
            num_scalar_prefetch=0,
            grid=(padded_rows // tm, n // tn),
            in_specs=[
                pl.BlockSpec((tm, k), lambda i, j: (i, 0)),
                pl.BlockSpec((k, tn), lambda i, j: (0, j)),
                pl.BlockSpec((tm, tn), lambda i, j: (i, j)),
            ],
            out_specs=pl.BlockSpec((tm, tn), lambda i, j: (i, j)),
        ),
        compiler_params=_compiler_params(2),
    )(xp, wt, rp)
    return out[:rows]


def swiglu_matmul_residual(gu2d, wt, res2d, inter, act):
    rows, two_inter = gu2d.shape
    assert two_inter == 2 * inter
    kw, n = wt.shape
    assert kw == inter and res2d.shape == (rows, n)
    tm = _pick_row_tile(rows)
    padded_rows = _round_up(rows, tm)
    tn = _pick_n_tile(n)
    gp = _pad_rows(gu2d, padded_rows)
    rp = _pad_rows(res2d, padded_rows)
    out = pl.pallas_call(
        functools.partial(_swiglu_matmul_residual_kernel, inter=inter, act=act),
        out_shape=jax.ShapeDtypeStruct((padded_rows, n), res2d.dtype),
        grid_spec=pltpu.PrefetchScalarGridSpec(
            num_scalar_prefetch=0,
            grid=(padded_rows // tm, n // tn),
            in_specs=[
                pl.BlockSpec((tm, two_inter), lambda i, j: (i, 0)),
                pl.BlockSpec((inter, tn), lambda i, j: (0, j)),
                pl.BlockSpec((tm, tn), lambda i, j: (i, j)),
            ],
            out_specs=pl.BlockSpec((tm, tn), lambda i, j: (i, j)),
        ),
        compiler_params=_compiler_params(2),
    )(gp, wt, rp)
    return out[:rows]


def causal_attention(q, k, v, scale):
    # q, k, v: (B*H, T, hd) with k/v already GQA-expanded and RoPE applied.
    bh, t, hd = q.shape
    hb = 1
    for cand in range(min(8, bh), 0, -1):   # a few heads per step; keeps grid >= 2 for megacore
        if bh % cand == 0:
            hb = cand
            break
    return pl.pallas_call(
        functools.partial(_causal_attention_kernel, scale=scale),
        out_shape=jax.ShapeDtypeStruct((bh, t, hd), q.dtype),
        grid_spec=pltpu.PrefetchScalarGridSpec(
            num_scalar_prefetch=0,
            grid=(bh // hb,),
            in_specs=[
                pl.BlockSpec((hb, t, hd), lambda b: (b, 0, 0)),
                pl.BlockSpec((hb, t, hd), lambda b: (b, 0, 0)),
                pl.BlockSpec((hb, t, hd), lambda b: (b, 0, 0)),
            ],
            out_specs=pl.BlockSpec((hb, t, hd), lambda b: (b, 0, 0)),
        ),
        compiler_params=_compiler_params(1),
    )(q, k, v)


# ---------------------------------------------------------------------------
# RoPE helpers (elementwise; done in the wrapper)
# ---------------------------------------------------------------------------
def _build_rope(head_dim, max_seq_len=2048):
    inv_freq = 1.0 / (10000.0 ** (jnp.arange(0, head_dim, 2, dtype=jnp.float32) / head_dim))
    t = jnp.arange(max_seq_len, dtype=jnp.float32)
    freqs = jnp.einsum("i,j->ij", t, inv_freq)
    emb = jnp.concatenate([freqs, freqs], axis=-1)
    return jnp.cos(emb), jnp.sin(emb)          # (max_seq, head_dim)


def _rotate_half(x):
    half = x.shape[-1] // 2
    return jnp.concatenate([-x[..., half:], x[..., :half]], axis=-1)


def _apply_rope(q, k, cos, sin, seq_len):
    c = cos[:seq_len][None, None]              # (1, 1, T, hd)
    s = sin[:seq_len][None, None]
    return q * c + _rotate_half(q) * s, k * c + _rotate_half(k) * s


# ---------------------------------------------------------------------------
# model forward (Pallas path)
# ---------------------------------------------------------------------------
def _block_forward(x, bp, cfg):
    b, t, dim = x.shape
    rows = b * t
    n_heads, n_kv, hd = cfg["n_heads"], cfg["n_kv_heads"], cfg["head_dim"]
    kv_dim = n_kv * hd
    x2d = x.reshape(rows, dim)

    # attention_norm fused with the QKV projection (single read of x)
    qkv = rmsnorm_matmul(x2d, bp["attn_norm_g"], bp["wqkv_t"], cfg["eps"])
    q = qkv[:, :dim].reshape(b, t, n_heads, hd).transpose(0, 2, 1, 3)
    k = qkv[:, dim:dim + kv_dim].reshape(b, t, n_kv, hd).transpose(0, 2, 1, 3)
    v = qkv[:, dim + kv_dim:].reshape(b, t, n_kv, hd).transpose(0, 2, 1, 3)

    q, k = _apply_rope(q, k, cfg["cos"], cfg["sin"], t)
    if n_kv != n_heads:
        rep = n_heads // n_kv
        k = jnp.repeat(k, rep, axis=1)         # repeat_interleave over heads
        v = jnp.repeat(v, rep, axis=1)

    scale = 1.0 / math.sqrt(hd)
    attn = causal_attention(
        q.reshape(b * n_heads, t, hd),
        k.reshape(b * n_heads, t, hd),
        v.reshape(b * n_heads, t, hd),
        scale,
    )
    attn2d = attn.reshape(b, n_heads, t, hd).transpose(0, 2, 1, 3).reshape(rows, dim)

    # output projection fused with residual add
    x2d = matmul_residual(attn2d, bp["wo_t"], x2d)

    # ffn_norm fused with gate+up projection; SwiGLU + down proj + residual fused
    gu = rmsnorm_matmul(x2d, bp["ffn_norm_g"], bp["w_gu_t"], cfg["eps"])
    x2d = swiglu_matmul_residual(gu, bp["w_down_t"], x2d, cfg["intermediate_size"], cfg["act"])
    return x2d.reshape(b, t, dim)


def model_forward(tokens, params, cfg):
    x = params["embedding"][tokens]            # token embedding gather (plain jnp)
    for layer_idx in range(cfg["n_layers"]):
        bp = params["blocks"][layer_idx % cfg["num_blocks"]]   # recursive weight sharing
        x = _block_forward(x, bp, cfg)
    b, t, dim = x.shape
    # final RMSNorm fused into the lm_head projection
    logits = rmsnorm_matmul(x.reshape(b * t, dim), params["final_norm_g"],
                            params["lm_head_t"], cfg["eps"])
    return logits.reshape(b, t, -1)


# ---------------------------------------------------------------------------
# pure-JAX reference (same weights, same math)
# ---------------------------------------------------------------------------
def _ref_rmsnorm(x, g, eps):
    ms = jnp.mean(x * x, axis=-1, keepdims=True)
    return g * (x * jax.lax.rsqrt(ms + eps))


def _ref_forward(tokens, params, cfg):
    x = params["embedding"][tokens]
    b, t, dim = x.shape
    n_heads, n_kv, hd = cfg["n_heads"], cfg["n_kv_heads"], cfg["head_dim"]
    kv_dim = n_kv * hd
    inter = cfg["intermediate_size"]
    for layer_idx in range(cfg["n_layers"]):
        bp = params["blocks"][layer_idx % cfg["num_blocks"]]
        h = _ref_rmsnorm(x, bp["attn_norm_g"], cfg["eps"])
        qkv = jnp.matmul(h, bp["wqkv_t"], precision=_HIGH)
        q = qkv[..., :dim].reshape(b, t, n_heads, hd).transpose(0, 2, 1, 3)
        k = qkv[..., dim:dim + kv_dim].reshape(b, t, n_kv, hd).transpose(0, 2, 1, 3)
        v = qkv[..., dim + kv_dim:].reshape(b, t, n_kv, hd).transpose(0, 2, 1, 3)
        q, k = _apply_rope(q, k, cfg["cos"], cfg["sin"], t)
        if n_kv != n_heads:
            rep = n_heads // n_kv
            k = jnp.repeat(k, rep, axis=1)
            v = jnp.repeat(v, rep, axis=1)
        scale = 1.0 / math.sqrt(hd)
        scores = jnp.einsum("bhqd,bhkd->bhqk", q, k, precision=_HIGH) * scale
        causal = jnp.triu(jnp.ones((t, t), dtype=bool), k=1)
        scores = jnp.where(causal[None, None], -jnp.inf, scores)
        attn = jax.nn.softmax(scores, axis=-1)
        out = jnp.einsum("bhqk,bhkd->bhqd", attn, v, precision=_HIGH)
        out = out.transpose(0, 2, 1, 3).reshape(b, t, dim)
        x = x + jnp.matmul(out, bp["wo_t"], precision=_HIGH)

        h = _ref_rmsnorm(x, bp["ffn_norm_g"], cfg["eps"])
        gate = jnp.matmul(h, bp["w_gu_t"][:, :inter], precision=_HIGH)
        up = jnp.matmul(h, bp["w_gu_t"][:, inter:], precision=_HIGH)
        x = x + jnp.matmul(cfg["act"](gate) * up, bp["w_down_t"], precision=_HIGH)
    h = _ref_rmsnorm(x, params["final_norm_g"], cfg["eps"])
    return jnp.matmul(h, params["lm_head_t"], precision=_HIGH)


# ---------------------------------------------------------------------------
# deterministic parameter construction (shared base weights + per-block LoRA)
# ---------------------------------------------------------------------------
def init_params(key, cfg):
    dim = cfg["dim"]
    vocab = cfg["vocab_size"]
    inter = cfg["intermediate_size"]
    kv_dim = cfg["n_kv_heads"] * cfg["head_dim"]   # == dim // 8
    rank = cfg["lora_rank"]

    ks = iter(jax.random.split(key, 8 + 12 * cfg["num_blocks"]))

    def normal(shape, std):
        return std * jax.random.normal(next(ks), shape, dtype=jnp.float32)

    embedding = normal((vocab, dim), 0.02)
    shared = {
        "attn_q": normal((dim, dim), 0.02),
        "attn_k": normal((kv_dim, dim), 0.02),
        "attn_v": normal((kv_dim, dim), 0.02),
        "attn_o": normal((dim, dim), 0.02),
    }

    def lora_delta(out_dim, in_dim):
        b_mat = normal((out_dim, rank), 1.0) / math.sqrt(rank)
        a_mat = normal((rank, in_dim), 1.0) / math.sqrt(rank)
        return jnp.matmul(b_mat, a_mat, precision=_HIGH)     # W_eff = W_shared + B @ A

    blocks = []
    for _ in range(cfg["num_blocks"]):
        wq = shared["attn_q"] + lora_delta(dim, dim)
        wk = shared["attn_k"] + lora_delta(kv_dim, dim)
        wv = shared["attn_v"] + lora_delta(kv_dim, dim)
        wo = shared["attn_o"] + lora_delta(dim, dim)
        gate = normal((inter, dim), 0.02)
        up = normal((inter, dim), 0.02)
        down = normal((dim, inter), 0.02)
        blocks.append({
            "wqkv_t": jnp.concatenate([wq.T, wk.T, wv.T], axis=1),   # (dim, dim + 2*kv_dim)
            "wo_t": wo.T,                                            # (dim, dim)
            "w_gu_t": jnp.concatenate([gate.T, up.T], axis=1),       # (dim, 2*inter)
            "w_down_t": down.T,                                      # (inter, dim)
            "attn_norm_g": jnp.ones((dim,), jnp.float32),
            "ffn_norm_g": jnp.ones((dim,), jnp.float32),
        })

    lm_head = normal((vocab, dim), 0.02)
    return {
        "embedding": embedding,
        "blocks": blocks,
        "final_norm_g": jnp.ones((dim,), jnp.float32),
        "lm_head_t": lm_head.T,                                      # (dim, vocab)
    }


# ---------------------------------------------------------------------------
if __name__ == "__main__":
    cfg = {
        "vocab_size": 512,
        "dim": 256,
        "n_layers": 4,
        "n_heads": 8,
        "intermediate_size": 512,
        "hidden_act": "silu",
        "num_blocks": 2,
        "lora_rank": 4,
        "eps": 1e-5,
    }
    cfg["head_dim"] = cfg["dim"] // cfg["n_heads"]       # 32
    cfg["n_kv_heads"] = cfg["n_heads"] // 8              # wk/wv output dim//8 -> n_heads/8 kv heads
    cfg["act"] = ACT2FN[cfg["hidden_act"]]
    cfg["cos"], cfg["sin"] = _build_rope(cfg["head_dim"], max_seq_len=2048)

    key = jax.random.PRNGKey(0)
    pkey, tkey = jax.random.split(key)
    params = init_params(pkey, cfg)

    batch, seq = 2, 16
    tokens = jax.random.randint(tkey, (batch, seq), 0, cfg["vocab_size"])

    logits = model_forward(tokens, params, cfg)
    logits = jax.block_until_ready(logits)

    ref = _ref_forward(tokens, params, cfg)
    assert logits.shape == (batch, seq, cfg["vocab_size"])
    max_diff = float(jnp.max(jnp.abs(logits - ref)))
    assert jnp.allclose(logits, ref, atol=2e-3, rtol=2e-3), (
        f"mismatch vs pure-JAX reference (max abs diff {max_diff})"
    )
    print("KERNEL_OK")
</pallas_src>

<mosaic_0001>
module attributes {stable_mosaic.version = 11 : i64} {
  func.func @_rmsnorm_matmul_kernel(%arg0: i32, %arg1: i32, %arg2: memref<32x256xf32, #tpu.memory_space<vmem>>, %arg3: memref<1x256xf32, #tpu.memory_space<vmem>>, %arg4: memref<256x320xf32, #tpu.memory_space<vmem>>, %arg5: memref<32x320xf32, #tpu.memory_space<vmem>>) attributes {dimension_semantics = [#tpu.dimension_semantics<parallel>, #tpu.dimension_semantics<parallel>], iteration_bounds = array<i64: 1, 1>, scalar_prefetch = 0 : i64, scratch_operands = 0 : i64, tpu.core_type = #tpu.core_type<tc>, window_params = [{transform_indices = @transform_0, window_bounds = array<i64: 32, 256>}, {pipeline_mode = #tpu.pipeline_mode<synchronous>, transform_indices = @transform_1, window_bounds = array<i64: 1, 256>}, {transform_indices = @transform_2, window_bounds = array<i64: 256, 320>}, {transform_indices = @transform_3, window_bounds = array<i64: 32, 320>}]} {
    %c0 = arith.constant 0 : index
    %c0_0 = arith.constant 0 : index
    %0 = vector.load %arg2[%c0, %c0_0] : memref<32x256xf32, #tpu.memory_space<vmem>>, vector<32x256xf32>
    %1 = arith.mulf %0, %0 : vector<32x256xf32>
    %cst = arith.constant dense<0.000000e+00> : vector<32xf32>
    %2 = vector.multi_reduction <add>, %1, %cst [1] : vector<32x256xf32> to vector<32xf32>
    %3 = vector.shape_cast %2 : vector<32xf32> to vector<32x1xf32>
    %cst_1 = arith.constant 2.560000e+02 : f32
    %4 = vector.broadcast %cst_1 : f32 to vector<32x1xf32>
    %5 = arith.divf %3, %4 : vector<32x1xf32>
    %cst_2 = arith.constant 9.99999974E-6 : f32
    %6 = vector.broadcast %cst_2 : f32 to vector<32x1xf32>
    %7 = arith.addf %5, %6 : vector<32x1xf32>
    %8 = math.rsqrt %7 : vector<32x1xf32>
    %c0_3 = arith.constant 0 : index
    %c0_4 = arith.constant 0 : index
    %9 = vector.load %arg3[%c0_3, %c0_4] : memref<1x256xf32, #tpu.memory_space<vmem>>, vector<1x256xf32>
    %10 = vector.broadcast %8 : vector<32x1xf32> to vector<32x256xf32>
    %11 = vector.broadcast %9 : vector<1x256xf32> to vector<32x256xf32>
    %12 = arith.mulf %10, %11 : vector<32x256xf32>
    %13 = arith.mulf %0, %12 : vector<32x256xf32>
    %c0_5 = arith.constant 0 : index
    %c0_6 = arith.constant 0 : index
    %14 = vector.load %arg4[%c0_5, %c0_6] : memref<256x320xf32, #tpu.memory_space<vmem>>, vector<256x320xf32>
    %cst_7 = arith.constant dense<0.000000e+00> : vector<32x320xf32>
    %15 = tpu.matmul %13, %14, %cst_7 {dimension_numbers = #tpu.dot_dimension_numbers<[1], [0], [0], [1], [0, 0, 1, 1], [], []>} : vector<32x256xf32>, vector<256x320xf32>, vector<32x320xf32> -> vector<32x320xf32>
    %c0_8 = arith.constant 0 : index
    %c0_9 = arith.constant 0 : index
    %16 = vector.load %arg5[%c0_8, %c0_9] : memref<32x320xf32, #tpu.memory_space<vmem>>, vector<32x320xf32>
    tpu.vector_store %arg5[%c0_8, %c0_9], %15 {strides = array<i32>} : memref<32x320xf32, #tpu.memory_space<vmem>>, vector<32x320xf32>,
    return
  }
  func.func @transform_0(%arg0: i32, %arg1: i32) -> (i32, i32) {
    %c0_i32 = arith.constant 0 : i32
    %c0_i32_0 = arith.constant 0 : i32
    return %arg0, %c0_i32 : i32, i32
  }
  func.func @transform_1(%arg0: i32, %arg1: i32) -> (i32, i32) {
    %c0_i32 = arith.constant 0 : i32
    %c0_i32_0 = arith.constant 0 : i32
    %c0_i32_1 = arith.constant 0 : i32
    return %c0_i32, %c0_i32_0 : i32, i32
  }
  func.func @transform_2(%arg0: i32, %arg1: i32) -> (i32, i32) {
    %c0_i32 = arith.constant 0 : i32
    %c0_i32_0 = arith.constant 0 : i32
    return %c0_i32, %arg1 : i32, i32
  }
  func.func @transform_3(%arg0: i32, %arg1: i32) -> (i32, i32) {
    %c0_i32 = arith.constant 0 : i32
    return %arg0, %arg1 : i32, i32
  }
}

</mosaic_0001>

<bundles_post_ra>
// kernel: tpu_custom_call.1
= control target key start
LH: loop header
LB: loop body
LE: loop exit
PB: predicated region body
PF: predicated region fallthrough
CT: control target
= control target key end

     0   :  { %8 = vsyncpa [#allocation3], 0  ;;  %s807_s0 = inlined_call_operand.hbm [shape: f32[32,256], index: 0, kind: input, shape index: {}]   ;;  %s808_s1 = inlined_call_operand.hbm [shape: f32[1,256], index: 1, kind: input, shape index: {}]   ;;  %s809_s2 = inlined_call_operand.hbm [shape: f32[256,320], index: 2, kind: input, shape index: {}]   ;;  %s810_s3 = inlined_call_operand.hbm [shape: f32[32,320], index: 3, kind: output, shape index: {}]  }
   0x1   :  { %9 = vsyncpa [#allocation6], 0 }
   0x2   :  { %10 = vsyncpa [#allocation4], 0  ;;  %s674_s12 = smov [#allocation5]   ;;  %s675_s14 = smov [#allocation2]  }
   0x3   :  { %s29_s13 = sshll.u32 %s674_s12, 4  ;;  %s16_s15 = sshll.u32 %s675_s14, 4  ;;  %s30_s13 = int_to_ptr.vmem [resolvable:$true] %s29_s13  ;;  %s702_s15 = int_to_ptr.vmem [resolvable:$true] %s16_s15 }
   0x4   :  { %s580_s18 = scalar_lea.hbm %s808_s1, 32 }
   0x5   :  { %p581_p0 = scmp.ne.s32.totalorder %s808_s1, %s580_s18  ;;  %p584_p1 = scmp.lt.u32.totalorder %s580_s18, %s808_s1 }
   0x7   :  { %p586_p2 = pnand %p584_p1, %p581_p0 }
   0x9   :  { %589 = shalt.err (!%p586_p2)
}
   0xa   :  { %s590_s23 = scalar_lea.vmem %s30_s13, 32  ;;  %p595_p4 = scmp.lt.s32.totalorder %s30_s13, %s30_s13 }
   0xb   :  { %p591_p3 = scmp.ne.s32.totalorder %s30_s13, %s590_s23  ;;  %p596_p5 = scmp.lt.s32.totalorder %s590_s23, %s590_s23 }
   0xd   :  { %p597_p6 = por %p596_p5, %p595_p4 }
   0xf   :  { %p598_p7 = pnand %p597_p6, %p591_p3 }
  0x11   :  { %601 = shalt.err (!%p598_p7)
}
  0x12   :  { %32 = dma.hbm_to_vmem [thread:$0]  %s808_s1, 32, %s30_s13, [#allocation6]  }
  0x13   :  { %s602_s28 = scalar_lea.hbm %s807_s0, 1024 }
  0x14   :  { %p603_p8 = scmp.ne.s32.totalorder %s807_s0, %s602_s28  ;;  %p606_p9 = scmp.lt.u32.totalorder %s602_s28, %s807_s0 }
  0x16   :  { %p608_p10 = pnand %p606_p9, %p603_p8 }
  0x18   :  { %611 = shalt.err (!%p608_p10)
}
  0x19   :  { %s612_s6 = scalar_lea.vmem %s702_s15, 1024  ;;  %p617_p12 = scmp.lt.s32.totalorder %s702_s15, %s702_s15 }
  0x1a   :  { %p613_p11 = scmp.ne.s32.totalorder %s702_s15, %s612_s6  ;;  %p618_p13 = scmp.lt.s32.totalorder %s612_s6, %s612_s6 }
  0x1c   :  { %p619_p0 = por %p618_p13, %p617_p12 }
  0x1e   :  { %p620_p1 = pnand %p619_p0, %p613_p11 }
  0x20   :  { %623 = shalt.err (!%p620_p1)
}
  0x21   :  { %s676_s1 = smov 256   ;;  %s677_s7 = smov 16  }
  0x22   :  { %22 = dma.hbm_to_vmem [thread:$0]  %s807_s0, 1024, %s702_s15, [#allocation3], %s676_s1, %s676_s1, %s677_s7  }
  0x23   :  { %s678_s10 = smov [#allocation7]   ;;  %s624_s14 = scalar_lea.hbm %s809_s2, 12288 }
  0x24   :  { %s38_s11 = sshll.u32 %s678_s10, 4  ;;  %p625_p2 = scmp.ne.s32.totalorder %s809_s2, %s624_s14  ;;  %s39_s11 = int_to_ptr.vmem [resolvable:$true] %s38_s11 }
  0x25   :  { %p628_p3 = scmp.lt.u32.totalorder %s624_s14, %s809_s2 }
  0x27   :  { %p630_p4 = pnand %p628_p3, %p625_p2 }
  0x29   :  { %633 = shalt.err (!%p630_p4)
}
  0x2a   :  { %s634_s20 = scalar_lea.vmem %s39_s11, 12288  ;;  %p639_p6 = scmp.lt.s32.totalorder %s39_s11, %s39_s11 }
  0x2b   :  { %p635_p5 = scmp.ne.s32.totalorder %s39_s11, %s634_s20  ;;  %p640_p7 = scmp.lt.s32.totalorder %s634_s20, %s634_s20 }
  0x2d   :  { %p641_p8 = por %p640_p7, %p639_p6 }
  0x2f   :  { %p642_p9 = pnand %p641_p8, %p635_p5 }
  0x31   :  { %645 = shalt.err (!%p642_p9)
}
  0x32   :  { %s679_s0 = smov 384   ;;  %s680_s15 = smov 24  }
  0x33   :  { %44 = dma.hbm_to_vmem [thread:$0]  %s809_s2, 12288, %s39_s11, [#allocation6], %s679_s0, %s679_s0, %s680_s15  }
  0x34   :  { %668 = dma.done.wait [#allocation3], 1024  }
  0x35   :  { %669 = vsyncadd [#allocation3], 4294966272 }
  0x36   :  { %670 = dma.done.wait [#allocation6], 12320  }
  0x37   :  { %671 = vsyncadd [#allocation6], 4294954976  ;;  %v748_v0 = vld [vmem:[#allocation2] sm:$0xff]  ;;  %v750_v1 = vld [vmem:[#allocation2 + $0x8] sm:$0xff]  ;;  %vm395_vm0 = vcmask 523264   ;;  %s681_s2 = smov [#allocation8]  }
  0x38   :  { %v752_v2 = vld [vmem:[#allocation2 + $0x10] sm:$0xff]  ;;  %v62_v3 = vmul.f32 %v748_v0, %v748_v0  ;;  %v63_v4 = vmul.f32 %v750_v1, %v750_v1  ;;  %v758_v5 = vld [vmem:[#allocation2 + $0x18] sm:$0xff]  ;;  %v762_v7 = vld [vmem:[#allocation2 + $0x20] sm:$0xff]  ;;  %s411_s23 = sshll.u32 %s681_s2, 4  ;;  %s412_s23 = int_to_ptr.vmem [resolvable:$true] %s411_s23 }
  0x39   :  { %v64_v6 = vmul.f32 %v752_v2, %v752_v2  ;;  %v764_v8 = vld [vmem:[#allocation2 + $0x28] sm:$0xff]  ;;  %v65_v9 = vmul.f32 %v758_v5, %v758_v5  ;;  %v66_v10 = vmul.f32 %v762_v7, %v762_v7  ;;  %v772_v12 = vld [vmem:[#allocation2 + $0x30] sm:$0xff]  ;;  %v774_v13 = vld [vmem:[#allocation2 + $0x38] sm:$0xff]  ;;  %s646_s24 = scalar_lea.vmem %s412_s23, 1536  ;;  %p651_p11 = scmp.lt.s32.totalorder %s412_s23, %s412_s23 }
  0x3a   :  { %v67_v11 = vmul.f32 %v764_v8, %v764_v8  ;;  %v124_v14 = vld [vmem:[#allocation7 + $0x8] sm:$0xff]  ;;  %v70_v15 = vadd.f32 %v63_v4, %v62_v3  ;;  %v68_v16 = vmul.f32 %v772_v12, %v772_v12  ;;  %v69_v17 = vmul.f32 %v774_v13, %v774_v13  ;;  %v127_v18 = vld [vmem:[#allocation7 + $0x20] sm:$0xff]  ;;  %v126_v20 = vld [vmem:[#allocation7 + $0x18] sm:$0xff]  ;;  %p647_p10 = scmp.ne.s32.totalorder %s412_s23, %s646_s24  ;;  %p652_p12 = scmp.lt.s32.totalorder %s646_s24, %s646_s24 }
  0x3b   :  { %v123_v19 = vld [vmem:[#allocation7] sm:$0xff]  ;;  %v468_v22 = vpack.c.bf16 %v127_v18, %v124_v14  ;;  %v130_v24 = vld [vmem:[#allocation7 + $0x38] sm:$0xff]  ;;  %v133_v25 = vld [vmem:[#allocation7 + $0x50] sm:$0xff]  ;;  %v73_v27 = vadd.f32 %v65_v9, %v64_v6 }
  0x3c   :  { %v76_v21 = vadd.f32 %v67_v11, %v66_v10  ;;  %v470_v23 = vpack.c.bf16 %v126_v20, %v123_v19  ;;  %v129_v26 = vld [vmem:[#allocation7 + $0x30] sm:$0xff]  ;;  %71 = vadd.xlane.f32.xlu0 %v70_v15  ;;  %v472_v28 = vpack.c.bf16 %v133_v25, %v130_v24  ;;  %v132_v29 = vld [vmem:[#allocation7 + $0x48] sm:$0xff]  ;;  %v139_v31 = vld [vmem:[#allocation7 + $0x80] sm:$0xff]  ;;  %v79_v32 = vadd.f32 %v69_v17, %v68_v16  ;;  %p653_p13 = por %p652_p12, %p651_p11 }
  0x3d   :  { %v136_v30 = vld [vmem:[#allocation7 + $0x68] sm:$0xff]  ;;  %469 = vmatprep.subr.bf16.mxu0 %v468_v22  ;;  %v474_v33 = vpack.c.bf16 %v132_v29, %v129_v26  ;;  %v135_v35 = vld [vmem:[#allocation7 + $0x60] sm:$0xff]  ;;  %v138_v36 = vld [vmem:[#allocation7 + $0x78] sm:$0xff] }
  0x3e   :  { %77 = vadd.xlane.f32.xlu1 %v76_v21  ;;  %471 = vmatpush1.bf16.msra.mxu0 %v470_v23  ;;  %v476_v34 = vpack.c.bf16 %v139_v31, %v136_v30  ;;  %v142_v37 = vld [vmem:[#allocation7 + $0x98] sm:$0xff]  ;;  %v145_v38 = vld [vmem:[#allocation7 + $0xb0] sm:$0xff]  ;;  %v478_v39 = vpack.c.bf16 %v138_v36, %v135_v35  ;;  %v144_v42 = vld [vmem:[#allocation7 + $0xa8] sm:$0xff]  ;;  %p654_p0 = pnand %p653_p13, %p647_p10 }
  0x3f   :  { %473 = vmatprep.subr.bf16.mxu0 %v472_v28  ;;  %v480_v40 = vpack.c.bf16 %v145_v38, %v142_v37  ;;  %v141_v41 = vld [vmem:[#allocation7 + $0x90] sm:$0xff]  ;;  %v148_v43 = vld [vmem:[#allocation7 + $0xc8] sm:$0xff]  ;;  %v151_v44 = vld [vmem:[#allocation7 + $0xe0] sm:$0xff] }
  0x40   :  { %74 = vadd.xlane.f32.xlu0 %v73_v27  ;;  %v173_v45 = vld [vmem:[#allocation7 + $0x190] sm:$0xff]  ;;  %v176_v46 = vld [vmem:[#allocation7 + $0x1a8] sm:$0xff]  ;;  %v482_v47 = vpack.c.bf16 %v144_v42, %v141_v41  ;;  %v484_v51 = vpack.c.bf16 %v151_v44, %v148_v43  ;;  %v147_v52 = vld [vmem:[#allocation7 + $0xc0] sm:$0xff] }
  0x41   :  { %v532_v48 = vpack.c.bf16 %v176_v46, %v173_v45  ;;  %v125_v49 = vld [vmem:[#allocation7 + $0x10] sm:$0xff]  ;;  %v128_v50 = vld [vmem:[#allocation7 + $0x28] sm:$0xff]  ;;  %v150_v53 = vld [vmem:[#allocation7 + $0xd8] sm:$0xff] }
  0x42   :  { %80 = vadd.xlane.f32.xlu1 %v79_v32  ;;  %475 = vmatpush1.bf16.msra.mxu0 %v474_v33  ;;  %v534_v54 = vpack.c.bf16 %v128_v50, %v125_v49  ;;  %v179_v55 = vld [vmem:[#allocation7 + $0x1c0] sm:$0xff]  ;;  %v154_v56 = vld [vmem:[#allocation7 + $0xf8] sm:$0xff]  ;;  %v157_v57 = vld [vmem:[#allocation7 + $0x110] sm:$0xff]  ;;  %v486_v62 = vpack.c.bf16 %v150_v53, %v147_v52 }
  0x43   :  { %477 = vmatprep.subr.bf16.mxu0 %v476_v34  ;;  %533 = vmatprep.subr.bf16.mxu1 %v532_v48  ;;  %v182_v58 = vld [vmem:[#allocation7 + $0x1d8] sm:$0xff]  ;;  %v131_v60 = vld [vmem:[#allocation7 + $0x40] sm:$0xff]  ;;  %v185_v3 = vld [vmem:[#allocation7 + $0x1f0] sm:$0xff]  ;;  %v488_v6 = vpack.c.bf16 %v157_v57, %v154_v56 }
  0x44   :  { %535 = vmatpush3.bf16.msra.mxu1 %v534_v54  ;;  %v536_v59 = vpack.c.bf16 %v182_v58, %v179_v55  ;;  %v134_v61 = vld [vmem:[#allocation7 + $0x58] sm:$0xff]  ;;  %v188_v4 = vld [vmem:[#allocation7 + $0x208] sm:$0xff]  ;;  %v153_v9 = vld [vmem:[#allocation7 + $0xf0] sm:$0xff] }
  0x45   :  { %v538_v63 = vpack.c.bf16 %v134_v61, %v131_v60  ;;  %v156_v10 = vld [vmem:[#allocation7 + $0x108] sm:$0xff]  ;;  %v540_v11 = vpack.c.bf16 %v188_v4, %v185_v3  ;;  %v137_v14 = vld [vmem:[#allocation7 + $0x70] sm:$0xff]  ;;  %v163_v16 = vld [vmem:[#allocation7 + $0x140] sm:$0xff] }
  0x46   :  { %479 = vmatpush1.bf16.msra.mxu0 %v478_v39  ;;  %537 = vmatprep.subr.bf16.mxu1 %v536_v59  ;;  %v160_v15 = vld [vmem:[#allocation7 + $0x128] sm:$0xff]  ;;  %v191_v19 = vld [vmem:[#allocation7 + $0x220] sm:$0xff]  ;;  %v194_v20 = vld [vmem:[#allocation7 + $0x238] sm:$0xff]  ;;  %v490_v21 = vpack.c.bf16 %v156_v10, %v153_v9 }
  0x47   :  { %481 = vmatprep.subr.bf16.mxu0 %v480_v40  ;;  %v140_v17 = vld [vmem:[#allocation7 + $0x88] sm:$0xff]  ;;  %v544_v22 = vpack.c.bf16 %v194_v20, %v191_v19  ;;  %v143_v23 = vld [vmem:[#allocation7 + $0xa0] sm:$0xff]  ;;  %v146_v24 = vld [vmem:[#allocation7 + $0xb8] sm:$0xff]  ;;  %v492_v25 = vpack.c.bf16 %v163_v16, %v160_v15 }
  0x48   :  { %539 = vmatpush3.bf16.msra.mxu1 %v538_v63  ;;  %v542_v18 = vpack.c.bf16 %v140_v17, %v137_v14  ;;  %v159_v26 = vld [vmem:[#allocation7 + $0x120] sm:$0xff]  ;;  %v162_v27 = vld [vmem:[#allocation7 + $0x138] sm:$0xff]  ;;  %v197_v28 = vld [vmem:[#allocation7 + $0x250] sm:$0xff]  ;;  %v546_v32 = vpack.c.bf16 %v146_v24, %v143_v23 }
  0x49   :  { %541 = vmatprep.subr.bf16.mxu1 %v540_v11  ;;  %v166_v29 = vld [vmem:[#allocation7 + $0x158] sm:$0xff]  ;;  %v169_v30 = vld [vmem:[#allocation7 + $0x170] sm:$0xff]  ;;  %v200_v31 = vld [vmem:[#allocation7 + $0x268] sm:$0xff]  ;;  %v494_v33 = vpack.c.bf16 %v162_v27, %v159_v26 }
  0x4a   :  { %483 = vmatpush1.bf16.msra.mxu0 %v482_v47  ;;  %v165_v34 = vld [vmem:[#allocation7 + $0x150] sm:$0xff]  ;;  %v548_v35 = vpack.c.bf16 %v200_v31, %v197_v28  ;;  %v152_v37 = vld [vmem:[#allocation7 + $0xe8] sm:$0xff]  ;;  %v496_v38 = vpack.c.bf16 %v169_v30, %v166_v29  ;;  %v203_v40 = vld [vmem:[#allocation7 + $0x280] sm:$0xff] }
  0x4b   :  { %485 = vmatprep.subr.bf16.mxu0 %v484_v51  ;;  %v149_v36 = vld [vmem:[#allocation7 + $0xd0] sm:$0xff]  ;;  %v168_v39 = vld [vmem:[#allocation7 + $0x168] sm:$0xff]  ;;  %v206_v41 = vld [vmem:[#allocation7 + $0x298] sm:$0xff] }
  0x4c   :  { %543 = vmatpush3.bf16.msra.mxu1 %v542_v18  ;;  %v172_v42 = vld [vmem:[#allocation7 + $0x188] sm:$0xff]  ;;  %v175_v43 = vld [vmem:[#allocation7 + $0x1a0] sm:$0xff]  ;;  %v550_v44 = vpack.c.bf16 %v152_v37, %v149_v36  ;;  %v498_v45 = vpack.c.bf16 %v168_v39, %v165_v34  ;;  %v552_v47 = vpack.c.bf16 %v206_v41, %v203_v40  ;;  %v158_v49 = vld [vmem:[#allocation7 + $0x118] sm:$0xff] }
  0x4d   :  { %545 = vmatprep.subr.bf16.mxu1 %v544_v22  ;;  %v171_v46 = vld [vmem:[#allocation7 + $0x180] sm:$0xff]  ;;  %v500_v50 = vpack.c.bf16 %v175_v43, %v172_v42  ;;  %v174_v51 = vld [vmem:[#allocation7 + $0x198] sm:$0xff]  ;;  %v209_v52 = vld [vmem:[#allocation7 + $0x2b0] sm:$0xff] }
  0x4e   :  { %487 = vmatpush1.bf16.msra.mxu0 %v486_v62  ;;  %v155_v48 = vld [vmem:[#allocation7 + $0x100] sm:$0xff]  ;;  %v212_v53 = vld [vmem:[#allocation7 + $0x2c8] sm:$0xff]  ;;  %v178_v54 = vld [vmem:[#allocation7 + $0x1b8] sm:$0xff]  ;;  %v502_v57 = vpack.c.bf16 %v174_v51, %v171_v46 }
  0x4f   :  { %489 = vmatprep.subr.bf16.mxu0 %v488_v6  ;;  %v181_v55 = vld [vmem:[#allocation7 + $0x1d0] sm:$0xff]  ;;  %v554_v56 = vpack.c.bf16 %v158_v49, %v155_v48  ;;  %v556_v59 = vpack.c.bf16 %v212_v53, %v209_v52  ;;  %v164_v61 = vld [vmem:[#allocation7 + $0x148] sm:$0xff]  ;;  %v215_v3 = vld [vmem:[#allocation7 + $0x2e0] sm:$0xff]  ;;  %v97_v53 = vlaneseq }
  0x50   :  { %547 = vmatpush3.bf16.msra.mxu1 %v546_v32  ;;  %v177_v58 = vld [vmem:[#allocation7 + $0x1b0] sm:$0xff]  ;;  %v504_v62 = vpack.c.bf16 %v181_v55, %v178_v54  ;;  %v180_v63 = vld [vmem:[#allocation7 + $0x1c8] sm:$0xff]  ;;  %v218_v4 = vld [vmem:[#allocation7 + $0x2f8] sm:$0xff] }
  0x51   :  { %549 = vmatprep.subr.bf16.mxu1 %v548_v35  ;;  %v161_v60 = vld [vmem:[#allocation7 + $0x130] sm:$0xff]  ;;  %v184_v6 = vld [vmem:[#allocation7 + $0x1e8] sm:$0xff]  ;;  %v187_v9 = vld [vmem:[#allocation7 + $0x200] sm:$0xff]  ;;  %v506_v11 = vpack.c.bf16 %v180_v63, %v177_v58  ;;  %v560_v14 = vpack.c.bf16 %v218_v4, %v215_v3 }
  0x52   :  { %491 = vmatpush1.bf16.msra.mxu0 %v490_v21  ;;  %v558_v10 = vpack.c.bf16 %v164_v61, %v161_v60  ;;  %v167_v15 = vld [vmem:[#allocation7 + $0x160] sm:$0xff]  ;;  %v170_v16 = vld [vmem:[#allocation7 + $0x178] sm:$0xff]  ;;  %v508_v17 = vpack.c.bf16 %v187_v9, %v184_v6  ;;  %v193_v21 = vld [vmem:[#allocation7 + $0x230] sm:$0xff]  ;;  %v98_v60 = vshrl.u32 %v97_v53, 7 }
  0x53   :  { %493 = vmatprep.subr.bf16.mxu0 %v492_v25  ;;  %v183_v18 = vld [vmem:[#allocation7 + $0x1e0] sm:$0xff]  ;;  %v186_v19 = vld [vmem:[#allocation7 + $0x1f8] sm:$0xff]  ;;  %v562_v22 = vpack.c.bf16 %v170_v16, %v167_v15  ;;  %v189_v25 = vld [vmem:[#allocation7 + $0x210] sm:$0xff] }
  0x54   :  { %551 = vmatpush3.bf16.msra.mxu1 %v550_v44  ;;  %v190_v20 = vld [vmem:[#allocation7 + $0x218] sm:$0xff]  ;;  %v510_v23 = vpack.c.bf16 %v186_v19, %v183_v18  ;;  %v192_v26 = vld [vmem:[#allocation7 + $0x228] sm:$0xff]  ;;  %v199_v28 = vld [vmem:[#allocation7 + $0x260] sm:$0xff]  ;;  %v99_v6 = vsub.s32 0, %v98_v60  ;;  %v103_v9 = vsub.s32 1, %v98_v60 }
  0x55   :  { %553 = vmatprep.subr.bf16.mxu1 %v552_v47  ;;  %v512_v24 = vpack.c.bf16 %v193_v21, %v190_v20  ;;  %v196_v27 = vld [vmem:[#allocation7 + $0x248] sm:$0xff]  ;;  %v514_v29 = vpack.c.bf16 %v192_v26, %v189_v25  ;;  %v195_v31 = vld [vmem:[#allocation7 + $0x240] sm:$0xff]  ;;  %v198_v32 = vld [vmem:[#allocation7 + $0x258] sm:$0xff] }
  0x56   :  { %495 = vmatpush1.bf16.msra.mxu0 %v494_v33  ;;  %v516_v30 = vpack.c.bf16 %v199_v28, %v196_v27  ;;  %v202_v33 = vld [vmem:[#allocation7 + $0x278] sm:$0xff]  ;;  %v205_v34 = vld [vmem:[#allocation7 + $0x290] sm:$0xff]  ;;  %v518_v35 = vpack.c.bf16 %v198_v32, %v195_v31  ;;  %v208_v39 = vld [vmem:[#allocation7 + $0x2a8] sm:$0xff] }
  0x57   :  { %497 = vmatprep.subr.bf16.mxu0 %v496_v38  ;;  %v520_v36 = vpack.c.bf16 %v205_v34, %v202_v33  ;;  %v201_v37 = vld [vmem:[#allocation7 + $0x270] sm:$0xff]  ;;  %v204_v38 = vld [vmem:[#allocation7 + $0x288] sm:$0xff]  ;;  %v211_v40 = vld [vmem:[#allocation7 + $0x2c0] sm:$0xff] }
  0x58   :  { %555 = vmatpush3.bf16.msra.mxu1 %v554_v56  ;;  %v522_v41 = vpack.c.bf16 %v204_v38, %v201_v37  ;;  %v524_v42 = vpack.c.bf16 %v211_v40, %v208_v39  ;;  %v207_v43 = vld [vmem:[#allocation7 + $0x2a0] sm:$0xff]  ;;  %v210_v44 = vld [vmem:[#allocation7 + $0x2b8] sm:$0xff]  ;;  %v217_v46 = vld [vmem:[#allocation7 + $0x2f0] sm:$0xff] }
  0x59   :  { %557 = vmatprep.subr.bf16.mxu1 %v556_v59  ;;  %v526_v47 = vpack.c.bf16 %v210_v44, %v207_v43  ;;  %v213_v49 = vld [vmem:[#allocation7 + $0x2d0] sm:$0xff] }
  0x5a   :  { %499 = vmatpush1.bf16.msra.mxu0 %v498_v45  ;;  %v214_v45 = vld [vmem:[#allocation7 + $0x2d8] sm:$0xff] }
  0x5b   :  { %501 = vmatprep.subr.bf16.mxu0 %v500_v50  ;;  %v528_v48 = vpack.c.bf16 %v217_v46, %v214_v45  ;;  %v216_v50 = vld [vmem:[#allocation7 + $0x2e8] sm:$0xff] }
  0x5c   :  { %559 = vmatpush3.bf16.msra.mxu1 %v558_v10  ;;  %v530_v51 = vpack.c.bf16 %v216_v50, %v213_v49  ;;  %v95_v10 = vld [vmem:[#allocation5] sm:$0x3] }
  0x5d   :  { %561 = vmatprep.subr.bf16.mxu1 %v560_v14  ;;  %v104_v14 = vrot.slane %v95_v10, %v103_v9 }
  0x5e   :  { %503 = vmatpush1.bf16.msra.mxu0 %v502_v57 }
  0x5f   :  { %505 = vmatprep.subr.bf16.mxu0 %v504_v62 }
  0x60   :  { %563 = vmatpush3.bf16.msra.mxu1 %v562_v22 }
  0x62   :  { %507 = vmatpush1.bf16.msra.mxu0 %v506_v11  ;;  %v100_v11 = vrot.slane %v95_v10, %v99_v6 }
  0x63   :  { %509 = vmatprep.subr.bf16.mxu0 %v508_v17 }
  0x66   :  { %511 = vmatpush1.bf16.msra.mxu0 %v510_v23 }
  0x67   :  { %513 = vmatprep.subr.bf16.mxu0 %v512_v24 }
  0x6a   :  { %515 = vmatpush1.bf16.msra.mxu0 %v514_v29 }
  0x6b   :  { %517 = vmatprep.subr.bf16.mxu0 %v516_v30 }
  0x6e   :  { %519 = vmatpush1.bf16.msra.mxu0 %v518_v35 }
  0x6f   :  { %521 = vmatprep.subr.bf16.mxu0 %v520_v36 }
  0x72   :  { %523 = vmatpush1.bf16.msra.mxu0 %v522_v41 }
  0x73   :  { %525 = vmatprep.subr.bf16.mxu0 %v524_v42 }
  0x76   :  { %527 = vmatpush1.bf16.msra.mxu0 %v526_v47 }
  0x77   :  { %529 = vmatprep.subr.bf16.mxu0 %v528_v48 }
  0x7a   :  { %531 = vmatpush1.bf16.msra.mxu0 %v530_v51 }
  0xc9   :  { %v72_v52 = vpop.xlane.xlu0 %71 }
  0xca   :  { %v83_v54 = vmul.f32 0.00390625, %v72_v52 }
  0xcb   :  { %v78_v55 = vpop.xlane.xlu1 %77 }
  0xcc   :  { %v85_v56 = vmul.f32 0.00390625, %v78_v55  ;;  %v87_v57 = vadd.f32 1e-05, %v83_v54 }
  0xcd   :  { %v75_v58 = vpop.xlane.xlu0 %74 }
  0xce   :  { %v89_v59 = vadd.f32 1e-05, %v85_v56  ;;  %572 = vrsqrt.f32 %v87_v57  ;;  %v84_v61 = vmul.f32 0.00390625, %v75_v58 }
  0xcf   :  { %v81_v62 = vpop.xlane.xlu1 %80 }
  0xd0   :  { %574 = vrsqrt.f32 %v89_v59  ;;  %v86_v63 = vmul.f32 0.00390625, %v81_v62  ;;  %v88_v3 = vadd.f32 1e-05, %v84_v61 }
  0xd2   :  { %v90_v4 = vadd.f32 1e-05, %v86_v63  ;;  %576 = vrsqrt.f32 %v88_v3 }
  0xd4   :  { %578 = vrsqrt.f32 %v90_v4 }
  0xd8   :  { %v573_v15 = vpop.eup %572 }
  0xd9   :  { %v108_v17 = vmul.f32 %v573_v15, %v104_v14  ;;  %v107_v18 = vmul.f32 %v573_v15, %v100_v11 }
  0xda   :  { %v575_v16 = vpop.eup %574 }
  0xdb   :  { %v116_v19 = vmul.f32 %v108_v17, %v750_v1  ;;  %v115_v20 = vmul.f32 %v107_v18, %v748_v0  ;;  %v112_v21 = vmul.f32 %v575_v16, %v104_v14  ;;  %v111_v26 = vmul.f32 %v575_v16, %v100_v11 }
  0xdc   :  { %v577_v22 = vpop.eup %576 }
  0xdd   :  { %283 = vmatprep.mubr.f32.mxu0 %v116_v19  ;;  %372 = vmatprep.mubr.f32.mxu1 %v116_v19  ;;  %v110_v24 = vmul.f32 %v577_v22, %v104_v14  ;;  %v109_v25 = vmul.f32 %v577_v22, %v100_v11  ;;  %v120_v29 = vmul.f32 %v112_v21, %v764_v8 }
  0xde   :  { %v579_v23 = vpop.eup %578  ;;  %284 = vmatmul.mubr.f32.vlgmr.msra.gmra.mrb[0].mxu0 %v115_v20  ;;  %373 = vmatmul.mubr.f32.vlgmr.msra.gmra.mrb[0].mxu1 %v115_v20  ;;  %v119_v0 = vmul.f32 %v111_v26, %v762_v7 }
  0xdf   :  { %v118_v27 = vmul.f32 %v110_v24, %v758_v5  ;;  %v117_v28 = vmul.f32 %v109_v25, %v752_v2  ;;  %v114_v30 = vmul.f32 %v579_v23, %v104_v14  ;;  %v113_v1 = vmul.f32 %v579_v23, %v100_v11 }
  0xe1   :  { %289 = vmatprep.mubr.f32.mxu0 %v118_v27  ;;  %377 = vmatprep.mubr.f32.mxu1 %v118_v27  ;;  %v122_v31 = vmul.f32 %v114_v30, %v774_v13  ;;  %v121_v5 = vmul.f32 %v113_v1, %v772_v12 }
  0xe2   :  { %290 = vmatmul.mubr.f32.gmra.mrb[2].mxu0 %v117_v28  ;;  %378 = vmatmul.mubr.f32.gmra.mrb[2].mxu1 %v117_v28 }
  0xe3   :  { %295 = vmatprep.mubr.f32.mxu0 %v120_v29  ;;  %382 = vmatprep.mubr.f32.mxu1 %v120_v29 }
  0xe6   :  { %296 = vmatmul.mubr.f32.gmra.mrb[4].mxu0 %v119_v0  ;;  %383 = vmatmul.mubr.f32.gmra.mrb[4].mxu1 %v119_v0 }
  0xe7   :  { %301 = vmatprep.mubr.f32.mxu0 %v122_v31  ;;  %387 = vmatprep.mubr.f32.mxu1 %v122_v31 }
  0xea   :  { %302 = vmatmul.mubr.f32.gmra.mrb[6].mxu0 %v121_v5  ;;  %388 = vmatmul.mubr.f32.gmra.mrb[6].mxu1 %v121_v5 }
 0x1b1   :  { %v285_v2 = vpop.f32.mrb[0].mxu0  ;;  %v456_v8 = vpop.f32.mrb[0].mxu1 }
 0x1b2   :  { %393 = vst [vmem:[#allocation8] sm:$0xff] %v285_v2  ;;  %v287_v32 = vpop.f32.mrb[1].mxu0  ;;  %v457_v33 = vpop.f32.mrb[1].mxu1 }
 0x1b3   :  { %394 = vst [vmem:[#allocation8 + $0x8] sm:$0xff] %v287_v32  ;;  %v458_v7 = vadd.f32 %v457_v33, %v456_v8 }
 0x1b5   :  { %396 = vst.msk [vmem:[#allocation8 + $0x10] sm:$0xff] %vm395_vm0, %v458_v7  ;;  %v291_v34 = vpop.f32.mrb[2].mxu0  ;;  %v459_v13 = vpop.f32.mrb[2].mxu1 }
 0x1b6   :  { %397 = vst [vmem:[#allocation8 + $0x18] sm:$0xff] %v291_v34  ;;  %v293_v35 = vpop.f32.mrb[3].mxu0  ;;  %v460_v36 = vpop.f32.mrb[3].mxu1 }
 0x1b7   :  { %398 = vst [vmem:[#allocation8 + $0x20] sm:$0xff] %v293_v35  ;;  %v461_v12 = vadd.f32 %v460_v36, %v459_v13 }
 0x1b9   :  { %399 = vst.msk [vmem:[#allocation8 + $0x28] sm:$0xff] %vm395_vm0, %v461_v12  ;;  %v297_v37 = vpop.f32.mrb[4].mxu0  ;;  %v462_v38 = vpop.f32.mrb[4].mxu1 }
 0x1ba   :  { %400 = vst [vmem:[#allocation8 + $0x30] sm:$0xff] %v297_v37  ;;  %v299_v39 = vpop.f32.mrb[5].mxu0  ;;  %v463_v40 = vpop.f32.mrb[5].mxu1 }
 0x1bb   :  { %401 = vst [vmem:[#allocation8 + $0x38] sm:$0xff] %v299_v39  ;;  %v464_v41 = vadd.f32 %v463_v40, %v462_v38 }
 0x1bd   :  { %402 = vst.msk [vmem:[#allocation8 + $0x40] sm:$0xff] %vm395_vm0, %v464_v41  ;;  %v303_v42 = vpop.f32.mrb[6].mxu0  ;;  %v465_v43 = vpop.f32.mrb[6].mxu1 }
 0x1be   :  { %403 = vst [vmem:[#allocation8 + $0x48] sm:$0xff] %v303_v42  ;;  %v305_v44 = vpop.f32.mrb[7].mxu0  ;;  %v466_v45 = vpop.f32.mrb[7].mxu1 }
 0x1bf   :  { %404 = vst [vmem:[#allocation8 + $0x50] sm:$0xff] %v305_v44  ;;  %v467_v46 = vadd.f32 %v466_v45, %v465_v43 }
 0x1c1   :  { %405 = vst.msk [vmem:[#allocation8 + $0x58] sm:$0xff] %vm395_vm0, %v467_v46 }
 0x1c2   :  { %657 = shalt.err (!%p654_p0)
}
 0x1c3   :  { %s658_s27 = scalar_lea.hbm %s810_s3, 1536 }
 0x1c4   :  { %p659_p1 = scmp.ne.s32.totalorder %s810_s3, %s658_s27  ;;  %p662_p2 = scmp.lt.u32.totalorder %s658_s27, %s810_s3 }
 0x1c6   :  { %p664_p3 = pnand %p662_p2, %p659_p1 }
 0x1c8   :  { %667 = shalt.err (!%p664_p3)
}
 0x1c9   :  { %417 = dma.vmem_to_hbm [thread:$0]  %s412_s23, 1536, %s810_s3, [#allocation4], %s679_s0, %s679_s0, %s680_s15  }
 0x1ca   :  { %672 = dma.done.wait [#allocation4], 1536  }
 0x1cb   :  { %673 = vsyncadd [#allocation4], 4294965760 }
 0x1cc   :  { %421 = vsyncpa [#allocation3], 1 }
 0x1cd   :  { %422 = vsyncpa [#allocation6], 1 }
 0x1ce   :  { %423 = vsyncpa [#allocation4], 1 }

</bundles_post_ra>
